<compile_context>
chip_gen: v6e
topology: v6e:2x2x1
jax: 0.10.0
libtpu: 0.0.40
codegen_flags: <defaults>
</compile_context>

<pallas_src>
import functools

import jax
import jax.numpy as jnp
from jax.experimental import pallas as pl
from jax.experimental.pallas import tpu as pltpu


raw_text = ('We are about to study the idea of a computational process.\n'
            'Computational processes are abstract beings that inhabit computers.\n'
            'As they evolve, processes manipulate other abstract things called data.\n'
            'The evolution of a process is directed by a pattern of rules\n'
            'called a program. People create programs to direct processes. In effect,\n'
            'we conjure the spirits of the computer with our spells.').split()

# Deterministic vocab ordering (set() order is not stable across runs).
vocab = sorted(set(raw_text))
vocab_size = len(vocab)
word_to_ix = {w: i for i, w in enumerate(vocab)}

EMBEDDING_DIM = 16
CONTEXT_SIZE = 2
HIDDEN = 128
LANE = 128       # TPU lane width; vocab / output padded to this
BM = 128         # batch tile (rows per grid step) = full MXU/sublane tile


def ngram_kernel(idx_ref, emb_ref, w1_ref, b1_ref, w2_ref, b2_ref, out_ref,
                 *, n_vocab):
    """One batch tile: gather (one-hot matmul) -> linear1+ReLU -> linear2 -> log_softmax.

    idx_ref: (BM, C) int32        word indices per context
    emb_ref: (Vp, E) bf16         zero-padded embedding table
    w1_ref : (C*E, H) bf16        b1_ref: (1, H) f32
    w2_ref : (H, Vp) bf16         b2_ref: (1, Vp) f32   (vocab padded to Vp)
    out_ref: (BM, Vp) f32         log-probs (padded lanes hold large negatives)
    """
    bm, ctx = idx_ref.shape
    vp, edim = emb_ref.shape
    hidden = w1_ref.shape[1]

    idx = idx_ref[...]                       # (BM, C) int32
    emb = emb_ref[...]                       # (Vp, E) bf16
    w1 = w1_ref[...]                         # (C*E, H) bf16

    lane = jax.lax.broadcasted_iota(jnp.int32, (bm, vp), 1)

    # Embedding gather fused as one-hot matmuls on the MXU, accumulated straight
    # into the first linear layer:  h = b1 + sum_c (onehot_c @ E) @ W1_c
    acc = jnp.zeros((bm, hidden), jnp.float32)
    for c in range(ctx):                     # static unroll, ctx == CONTEXT_SIZE
        onehot = (idx[:, c:c + 1] == lane).astype(jnp.bfloat16)      # (BM, Vp)
        x_c = jnp.dot(onehot, emb, preferred_element_type=jnp.float32)  # exact gather
        acc = acc + jnp.dot(x_c.astype(jnp.bfloat16),
                            w1[c * edim:(c + 1) * edim, :],
                            preferred_element_type=jnp.float32)

    # Element-wise path in f32 (v5e-friendly); MXU operands in bf16.
    h = jnp.maximum(acc + b1_ref[...], 0.0)

    logits = jnp.dot(h.astype(jnp.bfloat16), w2_ref[...],
                     preferred_element_type=jnp.float32) + b2_ref[...]

    # Mask padded vocab lanes so the log_softmax normalizer only sees real words.
    logits = jnp.where(lane < n_vocab, logits, jnp.float32(-1e30))

    m = jnp.max(logits, axis=-1, keepdims=True)
    shifted = logits - m
    lse = jnp.log(jnp.sum(jnp.exp(shifted), axis=-1, keepdims=True))
    out_ref[...] = shifted - lse


def ngram_forward_batched(contexts, emb, w1, b1, w2, b2):
    """contexts: int32[n, context_size]. Returns log_probs f32[n, vocab_size].

    Each row is exactly the original module's forward() for that context.
    """
    n, ctx = contexts.shape
    v, edim = emb.shape
    hidden = w1.shape[1]
    vp = pl.cdiv(v, LANE) * LANE
    bp = pl.cdiv(n, BM) * BM

    # Pad batch rows and vocab lanes to hardware-friendly sizes (glue, cheap).
    idx_p = jnp.zeros((bp, ctx), jnp.int32).at[:n].set(contexts.astype(jnp.int32))
    emb_p = jnp.zeros((vp, edim), emb.dtype).at[:v].set(emb)
    w2_p = jnp.zeros((hidden, vp), w2.dtype).at[:, :v].set(w2)
    b2_p = jnp.zeros((1, vp), b2.dtype).at[:, :v].set(b2)

    kernel = functools.partial(ngram_kernel, n_vocab=v)

    out = pl.pallas_call(
        kernel,
        out_shape=jax.ShapeDtypeStruct((bp, vp), jnp.float32),
        grid=(bp // BM,),
        in_specs=[
            pl.BlockSpec((BM, ctx), lambda i: (i, 0)),          # indices
            pl.BlockSpec((vp, edim), lambda i: (0, 0)),         # embedding table
            pl.BlockSpec((ctx * edim, hidden), lambda i: (0, 0)),  # W1
            pl.BlockSpec((1, hidden), lambda i: (0, 0)),        # b1
            pl.BlockSpec((hidden, vp), lambda i: (0, 0)),       # W2 (vocab-padded)
            pl.BlockSpec((1, vp), lambda i: (0, 0)),            # b2 (vocab-padded)
        ],
        out_specs=pl.BlockSpec((BM, vp), lambda i: (i, 0)),
        compiler_params=pltpu.CompilerParams(
            dimension_semantics=("parallel",)),                 # v7x: split batch across TCs
    )(idx_p, emb_p, w1, b1, w2_p, b2_p)

    return out[:n, :v]


def ngram_forward(inputs, emb, w1, b1, w2, b2):
    """Single context (matches the PyTorch forward signature): returns (1, vocab_size)."""
    return ngram_forward_batched(inputs.reshape(1, -1), emb, w1, b1, w2, b2)


def reference_forward_batched(contexts, emb, w1, b1, w2, b2):
    """Pure-JAX reference with the same bf16 MXU operands / f32 accumulation."""
    embeds = emb[contexts].reshape(contexts.shape[0], -1)           # bf16 gather
    h = jnp.maximum(
        jnp.dot(embeds, w1, preferred_element_type=jnp.float32) + b1, 0.0)
    logits = jnp.dot(h.astype(jnp.bfloat16), w2,
                     preferred_element_type=jnp.float32) + b2
    return jax.nn.log_softmax(logits, axis=-1)


if __name__ == "__main__":
    key = jax.random.PRNGKey(0)
    k_emb, k_w1, k_b1, k_w2, k_b2 = jax.random.split(key, 5)

    in_features = CONTEXT_SIZE * EMBEDDING_DIM
    # Weights stored transposed vs. PyTorch's (out, in): kernel computes x @ W + b.
    # MXU operands in bf16; biases (element-wise path) in f32.
    emb_table = jax.random.normal(
        k_emb, (vocab_size, EMBEDDING_DIM), jnp.float32).astype(jnp.bfloat16)
    w1 = (0.1 * jax.random.normal(
        k_w1, (in_features, HIDDEN), jnp.float32)).astype(jnp.bfloat16)
    b1 = 0.1 * jax.random.normal(k_b1, (1, HIDDEN), jnp.float32)
    w2 = (0.1 * jax.random.normal(
        k_w2, (HIDDEN, vocab_size), jnp.float32)).astype(jnp.bfloat16)
    b2 = 0.1 * jax.random.normal(k_b2, (1, vocab_size), jnp.float32)

    # All n-gram contexts of the corpus, processed in ONE kernel invocation.
    contexts = jnp.array(
        [[word_to_ix[raw_text[i - CONTEXT_SIZE + j]] for j in range(CONTEXT_SIZE)]
         for i in range(CONTEXT_SIZE, len(raw_text))], jnp.int32)

    log_probs = jax.block_until_ready(
        ngram_forward_batched(contexts, emb_table, w1, b1, w2, b2))
    ref = reference_forward_batched(contexts, emb_table, w1, b1, w2, b2)

    assert log_probs.shape == (contexts.shape[0], vocab_size)
    # bf16 MXU operands => allow a few bf16-ulp worth of divergence vs. reference.
    assert jnp.allclose(log_probs, ref, atol=5e-3, rtol=1e-3), \
        float(jnp.max(jnp.abs(log_probs - ref)))
    # log_softmax sanity: probabilities sum to 1 per row.
    assert jnp.allclose(jnp.sum(jnp.exp(log_probs), axis=-1), 1.0, atol=1e-3)

    # Single-context path (original module's forward signature) still works.
    single = jax.block_until_ready(
        ngram_forward(contexts[0], emb_table, w1, b1, w2, b2))
    assert single.shape == (1, vocab_size)
    assert jnp.allclose(single, ref[0:1], atol=5e-3, rtol=1e-3)

    print("KERNEL_OK")
</pallas_src>

<mosaic_0001>
module attributes {stable_mosaic.version = 11 : i64} {
  func.func @ngram_kernel(%arg0: i32, %arg1: memref<128x2xi32, #tpu.memory_space<vmem>>, %arg2: memref<128x16xbf16, #tpu.memory_space<vmem>>, %arg3: memref<32x128xbf16, #tpu.memory_space<vmem>>, %arg4: memref<1x128xf32, #tpu.memory_space<vmem>>, %arg5: memref<128x128xbf16, #tpu.memory_space<vmem>>, %arg6: memref<1x128xf32, #tpu.memory_space<vmem>>, %arg7: memref<128x128xf32, #tpu.memory_space<vmem>>) attributes {dimension_semantics = [#tpu.dimension_semantics<parallel>], iteration_bounds = array<i64: 1>, scalar_prefetch = 0 : i64, scratch_operands = 0 : i64, tpu.core_type = #tpu.core_type<tc>, window_params = [{transform_indices = @transform_0, window_bounds = array<i64: 128, 2>}, {pipeline_mode = #tpu.pipeline_mode<synchronous>, transform_indices = @transform_1, window_bounds = array<i64: 128, 16>}, {pipeline_mode = #tpu.pipeline_mode<synchronous>, transform_indices = @transform_2, window_bounds = array<i64: 32, 128>}, {pipeline_mode = #tpu.pipeline_mode<synchronous>, transform_indices = @transform_3, window_bounds = array<i64: 1, 128>}, {pipeline_mode = #tpu.pipeline_mode<synchronous>, transform_indices = @transform_4, window_bounds = array<i64: 128, 128>}, {pipeline_mode = #tpu.pipeline_mode<synchronous>, transform_indices = @transform_5, window_bounds = array<i64: 1, 128>}, {transform_indices = @transform_6, window_bounds = array<i64: 128, 128>}]} {
    %c0 = arith.constant 0 : index
    %c0_0 = arith.constant 0 : index
    %0 = vector.load %arg1[%c0, %c0_0] : memref<128x2xi32, #tpu.memory_space<vmem>>, vector<128x2xi32>
    %c0_1 = arith.constant 0 : index
    %c0_2 = arith.constant 0 : index
    %1 = vector.load %arg2[%c0_1, %c0_2] : memref<128x16xbf16, #tpu.memory_space<vmem>>, vector<128x16xbf16>
    %c0_3 = arith.constant 0 : index
    %c0_4 = arith.constant 0 : index
    %2 = vector.load %arg3[%c0_3, %c0_4] : memref<32x128xbf16, #tpu.memory_space<vmem>>, vector<32x128xbf16>
    %3 = tpu.iota {dimensions = array<i32: 1>} : vector<128x128xi32>
    %cst = arith.constant 0.000000e+00 : f32
    %4 = vector.broadcast %cst : f32 to vector<128x128xf32>
    %5 = vector.extract_strided_slice %0 {offsets = [0, 0], sizes = [128, 1], strides = [1, 1]} : vector<128x2xi32> to vector<128x1xi32>
    %6 = vector.broadcast %5 : vector<128x1xi32> to vector<128x128xi32>
    %7 = arith.cmpi eq, %6, %3 : vector<128x128xi32>
    %8 = arith.extui %7 : vector<128x128xi1> to vector<128x128xi32>
    %9 = arith.sitofp %8 : vector<128x128xi32> to vector<128x128xf32>
    %10 = arith.truncf %9 : vector<128x128xf32> to vector<128x128xbf16>
    %cst_5 = arith.constant dense<0.000000e+00> : vector<128x16xf32>
    %11 = tpu.matmul %10, %1, %cst_5 {dimension_numbers = #tpu.dot_dimension_numbers<[1], [0], [0], [1], [0, 0, 1, 1], [], []>} : vector<128x128xbf16>, vector<128x16xbf16>, vector<128x16xf32> -> vector<128x16xf32>
    %12 = arith.truncf %11 : vector<128x16xf32> to vector<128x16xbf16>
    %13 = vector.extract_strided_slice %2 {offsets = [0, 0], sizes = [16, 128], strides = [1, 1]} : vector<32x128xbf16> to vector<16x128xbf16>
    %cst_6 = arith.constant dense<0.000000e+00> : vector<128x128xf32>
    %14 = tpu.matmul %12, %13, %cst_6 {dimension_numbers = #tpu.dot_dimension_numbers<[1], [0], [0], [1], [0, 0, 1, 1], [], []>} : vector<128x16xbf16>, vector<16x128xbf16>, vector<128x128xf32> -> vector<128x128xf32>
    %15 = arith.addf %4, %14 : vector<128x128xf32>
    %16 = vector.extract_strided_slice %0 {offsets = [0, 1], sizes = [128, 1], strides = [1, 1]} : vector<128x2xi32> to vector<128x1xi32>
    %17 = vector.broadcast %16 : vector<128x1xi32> to vector<128x128xi32>
    %18 = arith.cmpi eq, %17, %3 : vector<128x128xi32>
    %19 = arith.extui %18 : vector<128x128xi1> to vector<128x128xi32>
    %20 = arith.sitofp %19 : vector<128x128xi32> to vector<128x128xf32>
    %21 = arith.truncf %20 : vector<128x128xf32> to vector<128x128xbf16>
    %cst_7 = arith.constant dense<0.000000e+00> : vector<128x16xf32>
    %22 = tpu.matmul %21, %1, %cst_7 {dimension_numbers = #tpu.dot_dimension_numbers<[1], [0], [0], [1], [0, 0, 1, 1], [], []>} : vector<128x128xbf16>, vector<128x16xbf16>, vector<128x16xf32> -> vector<128x16xf32>
    %23 = arith.truncf %22 : vector<128x16xf32> to vector<128x16xbf16>
    %24 = vector.extract_strided_slice %2 {offsets = [16, 0], sizes = [16, 128], strides = [1, 1]} : vector<32x128xbf16> to vector<16x128xbf16>
    %cst_8 = arith.constant dense<0.000000e+00> : vector<128x128xf32>
    %25 = tpu.matmul %23, %24, %cst_8 {dimension_numbers = #tpu.dot_dimension_numbers<[1], [0], [0], [1], [0, 0, 1, 1], [], []>} : vector<128x16xbf16>, vector<16x128xbf16>, vector<128x128xf32> -> vector<128x128xf32>
    %26 = arith.addf %15, %25 : vector<128x128xf32>
    %c0_9 = arith.constant 0 : index
    %c0_10 = arith.constant 0 : index
    %27 = vector.load %arg4[%c0_9, %c0_10] : memref<1x128xf32, #tpu.memory_space<vmem>>, vector<1x128xf32>
    %28 = vector.broadcast %27 : vector<1x128xf32> to vector<128x128xf32>
    %29 = arith.addf %26, %28 : vector<128x128xf32>
    %cst_11 = arith.constant 0.000000e+00 : f32
    %30 = vector.broadcast %cst_11 : f32 to vector<128x128xf32>
    %31 = arith.maximumf %29, %30 : vector<128x128xf32>
    %32 = arith.truncf %31 : vector<128x128xf32> to vector<128x128xbf16>
    %c0_12 = arith.constant 0 : index
    %c0_13 = arith.constant 0 : index
    %33 = vector.load %arg5[%c0_12, %c0_13] : memref<128x128xbf16, #tpu.memory_space<vmem>>, vector<128x128xbf16>
    %cst_14 = arith.constant dense<0.000000e+00> : vector<128x128xf32>
    %34 = tpu.matmul %32, %33, %cst_14 {dimension_numbers = #tpu.dot_dimension_numbers<[1], [0], [0], [1], [0, 0, 1, 1], [], []>} : vector<128x128xbf16>, vector<128x128xbf16>, vector<128x128xf32> -> vector<128x128xf32>
    %c0_15 = arith.constant 0 : index
    %c0_16 = arith.constant 0 : index
    %35 = vector.load %arg6[%c0_15, %c0_16] : memref<1x128xf32, #tpu.memory_space<vmem>>, vector<1x128xf32>
    %36 = vector.broadcast %35 : vector<1x128xf32> to vector<128x128xf32>
    %37 = arith.addf %34, %36 : vector<128x128xf32>
    %c49_i32 = arith.constant 49 : i32
    %38 = vector.broadcast %c49_i32 : i32 to vector<128x128xi32>
    %39 = arith.cmpi slt, %3, %38 : vector<128x128xi32>
    %cst_17 = arith.constant -1.000000e+30 : f32
    %40 = vector.broadcast %cst_17 : f32 to vector<128x128xf32>
    %41 = arith.select %39, %37, %40 : vector<128x128xi1>, vector<128x128xf32>
    %cst_18 = arith.constant dense<0xFF800000> : vector<128xf32>
    %42 = vector.multi_reduction <maximumf>, %41, %cst_18 [1] : vector<128x128xf32> to vector<128xf32>
    %43 = vector.shape_cast %42 : vector<128xf32> to vector<128x1xf32>
    %44 = vector.broadcast %43 : vector<128x1xf32> to vector<128x128xf32>
    %45 = arith.subf %41, %44 : vector<128x128xf32>
    %46 = math.exp %45 : vector<128x128xf32>
    %cst_19 = arith.constant dense<0.000000e+00> : vector<128xf32>
    %47 = vector.multi_reduction <add>, %46, %cst_19 [1] : vector<128x128xf32> to vector<128xf32>
    %48 = vector.shape_cast %47 : vector<128xf32> to vector<128x1xf32>
    %49 = math.log %48 : vector<128x1xf32>
    %50 = vector.broadcast %49 : vector<128x1xf32> to vector<128x128xf32>
    %51 = arith.subf %45, %50 : vector<128x128xf32>
    %c0_20 = arith.constant 0 : index
    %c0_21 = arith.constant 0 : index
    %52 = vector.load %arg7[%c0_20, %c0_21] : memref<128x128xf32, #tpu.memory_space<vmem>>, vector<128x128xf32>
    tpu.vector_store %arg7[%c0_20, %c0_21], %51 {strides = array<i32>} : memref<128x128xf32, #tpu.memory_space<vmem>>, vector<128x128xf32>,
    return
  }
  func.func @transform_0(%arg0: i32) -> (i32, i32) {
    %c0_i32 = arith.constant 0 : i32
    %c0_i32_0 = arith.constant 0 : i32
    return %arg0, %c0_i32 : i32, i32
  }
  func.func @transform_1(%arg0: i32) -> (i32, i32) {
    %c0_i32 = arith.constant 0 : i32
    %c0_i32_0 = arith.constant 0 : i32
    %c0_i32_1 = arith.constant 0 : i32
    return %c0_i32, %c0_i32_0 : i32, i32
  }
  func.func @transform_2(%arg0: i32) -> (i32, i32) {
    %c0_i32 = arith.constant 0 : i32
    %c0_i32_0 = arith.constant 0 : i32
    %c0_i32_1 = arith.constant 0 : i32
    return %c0_i32, %c0_i32_0 : i32, i32
  }
  func.func @transform_3(%arg0: i32) -> (i32, i32) {
    %c0_i32 = arith.constant 0 : i32
    %c0_i32_0 = arith.constant 0 : i32
    %c0_i32_1 = arith.constant 0 : i32
    return %c0_i32, %c0_i32_0 : i32, i32
  }
  func.func @transform_4(%arg0: i32) -> (i32, i32) {
    %c0_i32 = arith.constant 0 : i32
    %c0_i32_0 = arith.constant 0 : i32
    %c0_i32_1 = arith.constant 0 : i32
    return %c0_i32, %c0_i32_0 : i32, i32
  }
  func.func @transform_5(%arg0: i32) -> (i32, i32) {
    %c0_i32 = arith.constant 0 : i32
    %c0_i32_0 = arith.constant 0 : i32
    %c0_i32_1 = arith.constant 0 : i32
    return %c0_i32, %c0_i32_0 : i32, i32
  }
  func.func @transform_6(%arg0: i32) -> (i32, i32) {
    %c0_i32 = arith.constant 0 : i32
    %c0_i32_0 = arith.constant 0 : i32
    return %arg0, %c0_i32 : i32, i32
  }
}

</mosaic_0001>

<bundles_post_ra>
// kernel: tpu_custom_call.1
= control target key start
LH: loop header
LB: loop body
LE: loop exit
PB: predicated region body
PF: predicated region fallthrough
CT: control target
= control target key end

     0   :  { %v1650_v2 = vmov 1   ;;  %v1651_v9 = vmov 0   ;;  %s2049_s0 = inlined_call_operand.vmem [shape: s32[128,2], index: 0, kind: input, shape index: {}]   ;;  %s2050_s1 = inlined_call_operand.vmem [shape: bf16[128,16], index: 1, kind: input, shape index: {}]   ;;  %s2051_s2 = inlined_call_operand.vmem [shape: bf16[32,128], index: 2, kind: input, shape index: {}]   ;;  %s2052_s3 = inlined_call_operand.vmem [shape: f32[1,128], index: 3, kind: input, shape index: {}]   ;;  %s2053_s4 = inlined_call_operand.vmem [shape: bf16[128,128], index: 4, kind: input, shape index: {}]   ;;  %s2054_s5 = inlined_call_operand.vmem [shape: f32[1,128], index: 5, kind: input, shape index: {}]   ;;  %s2055_s6 = inlined_call_operand.hbm [shape: f32[128,128], index: 6, kind: output, shape index: {}]  }
   0x1   :  { %v27_v0 = vld [vmem:[%s2049_s0 + $0x10] sm:$0xff]  ;;  %v25_v1 = vld [vmem:[%s2049_s0] sm:$0xff]  ;;  %1530 = vset.pattern.permute.xlu0 %v1650_v2  ;;  %1528 = vset.pattern.permute.xlu1 %v1650_v2  ;;  %v26_v4 = vld [vmem:[%s2049_s0 + $0x8] sm:$0xff] }
   0x2   :  { %327 = vperm.xlu0 %1530, %v27_v0   ;;  %321 = vperm.xlu1 %1528, %v25_v1   ;;  %v31_v3 = vld [vmem:[%s2049_s0 + $0x30] sm:$0xff]  ;;  %v1546_v6 = vld [vmem:[%s2050_s1 + $0x38] sm:$0xff]   ;;  %v1548_v10 = vld [vmem:[%s2050_s1 + $0x28] sm:$0xff]  }
   0x3   :  { %v1708_v5 = vld [vmem:[%s2049_s0 + $0x50] sm:$0xff]  ;;  %v28_v8 = vld [vmem:[%s2049_s0 + $0x18] sm:$0xff]  ;;  %1406 = vmatprep.subr.bf16.mxu1 %v1546_v6  ;;  %1374 = vmatprep.subr.bf16.mxu0 %v1546_v6  ;;  %v1549_v11 = vld [vmem:[%s2050_s1 + $0x20] sm:$0xff]  }
   0x4   :  { %v1547_v7 = vld [vmem:[%s2050_s1 + $0x30] sm:$0xff]   ;;  %1407 = vmatpush3.bf16.msra.mxu1 %v1546_v6  ;;  %1375 = vmatpush3.bf16.msra.mxu0 %v1546_v6  ;;  %v29_v12 = vld [vmem:[%s2049_s0 + $0x20] sm:$0xff]  ;;  %v1550_v13 = vld [vmem:[%s2050_s1 + $0x18] sm:$0xff]  }
   0x5   :  { %1408 = vmatprep.subr.bf16.mxu1 %v1547_v7  ;;  %1376 = vmatprep.subr.bf16.mxu0 %v1547_v7 }
   0x6   :  { %339 = vperm.xlu0 %1530, %v31_v3   ;;  %324 = vperm.xlu1 %1528, %v26_v4  }
   0x8   :  { %1409 = vmatpush3.bf16.msra.mxu1 %v1547_v7  ;;  %1377 = vmatpush3.bf16.msra.mxu0 %v1547_v7 }
   0x9   :  { %1410 = vmatprep.subr.bf16.mxu1 %v1548_v10  ;;  %1378 = vmatprep.subr.bf16.mxu0 %v1548_v10 }
   0xa   :  { %351 = vperm.xlu0 %1530, %v1708_v5   ;;  %1529 = vset.pattern.permute.xlu1 %v1651_v9 }
   0xb   :  { %73 = vperm.xlu1 %1529, %v28_v8  }
   0xc   :  { %1411 = vmatpush3.bf16.msra.mxu1 %v1548_v10  ;;  %1379 = vmatpush3.bf16.msra.mxu0 %v1548_v10 }
   0xd   :  { %1412 = vmatprep.subr.bf16.mxu1 %v1549_v11  ;;  %1380 = vmatprep.subr.bf16.mxu0 %v1549_v11 }
   0xe   :  { %1539 = vset.pattern.permute.xlu0 %v1651_v9 }
   0xf   :  { %64 = vperm.xlu0 %1539, %v25_v1   ;;  %1531 = vset.pattern.permute.xlu1 %v1650_v2 }
  0x10   :  { %330 = vperm.xlu1 %1531, %v28_v8  }
  0x13   :  { %67 = vperm.xlu0 %1539, %v26_v4  }
  0x14   :  { %1532 = vset.pattern.permute.xlu1 %v1651_v9 }
  0x15   :  { %11 = vsyncpa [#allocation3], 0  ;;  %76 = vperm.xlu1 %1532, %v29_v12   ;;  %1413 = vmatpush3.bf16.msra.mxu1 %v1549_v11  ;;  %v1551_v14 = vld [vmem:[%s2050_s1 + $0x10] sm:$0xff]   ;;  %v30_v15 = vld [vmem:[%s2049_s0 + $0x28] sm:$0xff]  ;;  %v61_v26 = vlaneseq  ;;  %v1652_v32 = vmov 1.0|1.0  }
  0x16   :  { %1414 = vmatprep.subr.bf16.mxu1 %v1550_v13  ;;  %1381 = vmatpush3.bf16.msra.mxu0 %v1549_v11  ;;  %v1552_v16 = vld [vmem:[%s2050_s1 + $0x8] sm:$0xff]   ;;  %v1553_v17 = vld [vmem:[%s2050_s1] sm:$0xff]   ;;  %v32_v18 = vld [vmem:[%s2049_s0 + $0x38] sm:$0xff] }
  0x17   :  { %70 = vperm.xlu0 %1539, %v27_v0   ;;  %1382 = vmatprep.subr.bf16.mxu0 %v1550_v13  ;;  %v34_v19 = vld [vmem:[%s2049_s0 + $0x48] sm:$0xff]  ;;  %v33_v21 = vld [vmem:[%s2049_s0 + $0x40] sm:$0xff]  ;;  %v39_v22 = vld [vmem:[%s2049_s0 + $0x70] sm:$0xff]  ;;  %v1785_v29 = vand.u32 127, %v61_v26 }
  0x18   :  { %v38_v20 = vld [vmem:[%s2049_s0 + $0x68] sm:$0xff]  ;;  %v36_v23 = vld [vmem:[%s2049_s0 + $0x58] sm:$0xff]  ;;  %v37_v24 = vld [vmem:[%s2049_s0 + $0x60] sm:$0xff] }
  0x19   :  { %1533 = vset.pattern.permute.xlu1 %v1650_v2  ;;  %1415 = vmatpush3.bf16.msra.mxu1 %v1550_v13  ;;  %v40_v25 = vld [vmem:[%s2049_s0 + $0x78] sm:$0xff]  ;;  %v1554_v60 = vld [vmem:[%s2051_s2 + $0x8] sm:$0xff]   ;;  %v1555_v62 = vld [vmem:[%s2051_s2] sm:$0xff]  }
  0x1a   :  { %333 = vperm.xlu1 %1533, %v29_v12   ;;  %1416 = vmatprep.subr.bf16.mxu1 %v1551_v14  ;;  %v1556_v63 = vld [vmem:[%s2053_s4 + $0x38] sm:$0xff]   ;;  %v1557_v7 = vld [vmem:[%s2053_s4 + $0x30] sm:$0xff]   ;;  %v1558_v10 = vld [vmem:[%s2053_s4 + $0x28] sm:$0xff]  }
  0x1b   :  { %79 = vperm.xlu0 %1539, %v30_v15   ;;  %1383 = vmatpush3.bf16.msra.mxu0 %v1550_v13 }
  0x1c   :  { %1384 = vmatprep.subr.bf16.mxu0 %v1551_v14 }
  0x1d   :  { %1417 = vmatpush3.bf16.msra.mxu1 %v1551_v14 }
  0x1e   :  { %336 = vperm.xlu1 %1533, %v30_v15   ;;  %1418 = vmatprep.subr.bf16.mxu1 %v1552_v16 }
  0x1f   :  { %82 = vperm.xlu0 %1539, %v31_v3   ;;  %1385 = vmatpush3.bf16.msra.mxu0 %v1551_v14 }
  0x20   :  { %1386 = vmatprep.subr.bf16.mxu0 %v1552_v16 }
  0x21   :  { %1419 = vmatpush3.bf16.msra.mxu1 %v1552_v16 }
  0x22   :  { %1534 = vset.pattern.permute.xlu1 %v1651_v9  ;;  %1420 = vmatprep.subr.bf16.mxu1 %v1553_v17 }
  0x23   :  { %85 = vperm.xlu1 %1534, %v32_v18   ;;  %91 = vperm.xlu0 %1539, %v34_v19  }
  0x24   :  { %1387 = vmatpush3.bf16.msra.mxu0 %v1552_v16 }
  0x25   :  { %1421 = vmatpush3.bf16.msra.mxu1 %v1553_v17  ;;  %1388 = vmatprep.subr.bf16.mxu0 %v1553_v17 }
  0x26   :  { %1456 = vmatprep.subr.bf16.mxu1 %v1555_v62 }
  0x27   :  { %1535 = vset.pattern.permute.xlu1 %v1650_v2  ;;  %94 = vperm.xlu0 %1539, %v1708_v5  }
  0x28   :  { %342 = vperm.xlu1 %1535, %v32_v18   ;;  %1389 = vmatpush3.bf16.msra.mxu0 %v1553_v17 }
  0x29   :  { %1438 = vmatprep.subr.bf16.mxu0 %v1554_v60 }
  0x2b   :  { %103 = vperm.xlu0 %1539, %v38_v20  }
  0x2c   :  { %1536 = vset.pattern.permute.xlu1 %v1651_v9 }
  0x2d   :  { %88 = vperm.xlu1 %1536, %v33_v21  }
  0x2f   :  { %106 = vperm.xlu0 %1539, %v39_v22  }
  0x31   :  { %1537 = vset.pattern.permute.xlu1 %v1650_v2 }
  0x32   :  { %345 = vperm.xlu1 %1537, %v33_v21  }
  0x33   :  { %1544 = vset.pattern.permute.xlu0 %v1650_v2 }
  0x34   :  { %363 = vperm.xlu0 %1544, %v39_v22  }
  0x36   :  { %348 = vperm.xlu1 %1537, %v34_v19  }
  0x3a   :  { %1538 = vset.pattern.permute.xlu1 %v1651_v9 }
  0x3b   :  { %97 = vperm.xlu1 %1538, %v36_v23  }
  0x3f   :  { %1540 = vset.pattern.permute.xlu1 %v1650_v2 }
  0x40   :  { %354 = vperm.xlu1 %1540, %v36_v23  }
  0x44   :  { %1541 = vset.pattern.permute.xlu1 %v1651_v9 }
  0x45   :  { %100 = vperm.xlu1 %1541, %v37_v24  }
  0x49   :  { %1542 = vset.pattern.permute.xlu1 %v1650_v2 }
  0x4a   :  { %357 = vperm.xlu1 %1542, %v37_v24  }
  0x4e   :  { %360 = vperm.xlu1 %1542, %v38_v20  }
  0x52   :  { %1543 = vset.pattern.permute.xlu1 %v1651_v9 }
  0x53   :  { %109 = vperm.xlu1 %1543, %v40_v25  }
  0x57   :  { %1545 = vset.pattern.permute.xlu1 %v1650_v2 }
  0x58   :  { %366 = vperm.xlu1 %1545, %v40_v25  }
  0x7d   :  { %v322_v27 = vpop.permute.xlu1 %321  ;;  %v328_v28 = vpop.permute.xlu0 %327 }
  0x7e   :  { %vm368_vm0 = vcmp.eq.s32.totalorder %v322_v27, %v1785_v29  ;;  %vm370_vm3 = vcmp.eq.s32.totalorder %v328_v28, %v1785_v29 }
  0x81   :  { %v325_v30 = vpop.permute.xlu1 %324  ;;  %v340_v31 = vpop.permute.xlu0 %339 }
  0x82   :  { %vm369_vm1 = vcmp.eq.s32.totalorder %v325_v30, %v1785_v29 }
  0x83   :  { %vm1264_vm2 = vmpackc.low %vm369_vm1, %vm368_vm0 }
  0x84   :  { %1422 = vmatprep.mubr.msk.bf16.mxu1 %vm1264_vm2, %v1652_v32 }
  0x85   :  { %v352_v33 = vpop.permute.xlu0 %351 }
  0x86   :  { %v74_v34 = vpop.permute.xlu1 %73 }
  0x87   :  { %vm114_vm9 = vcmp.eq.s32.totalorder %v74_v34, %v1785_v29 }
  0x8a   :  { %v65_v35 = vpop.permute.xlu0 %64 }
  0x8b   :  { %v331_v36 = vpop.permute.xlu1 %330  ;;  %vm111_vm5 = vcmp.eq.s32.totalorder %v65_v35, %v1785_v29 }
  0x8c   :  { %vm371_vm4 = vcmp.eq.s32.totalorder %v331_v36, %v1785_v29 }
  0x8d   :  { %vm1266_vm6 = vmpackc.low %vm371_vm4, %vm370_vm3 }
  0x8e   :  { %v68_v37 = vpop.permute.xlu0 %67  ;;  %1423 = vmatmul.mubr.msk.bf16.vlgmr.msra.gmra.mxu1 %vm1266_vm6, %v1652_v32 }
  0x8f   :  { %vm112_vm7 = vcmp.eq.s32.totalorder %v68_v37, %v1785_v29  ;;  %1457 = vmatpush3.bf16.msra.mxu1 %v1555_v62 }
  0x90   :  { %v77_v38 = vpop.permute.xlu1 %76  ;;  %vm1232_vm8 = vmpackc.low %vm112_vm7, %vm111_vm5  ;;  %vm374_vm5 = vcmp.eq.s32.totalorder %v340_v31, %v1785_v29  ;;  %1506 = vmatprep.subr.bf16.mxu1 %v1556_v63 }
  0x91   :  { %1390 = vmatprep.mubr.msk.bf16.mxu0 %vm1232_vm8, %v1652_v32  ;;  %vm115_vm12 = vcmp.eq.s32.totalorder %v77_v38, %v1785_v29 }
  0x92   :  { %v71_v39 = vpop.permute.xlu0 %70 }
  0x93   :  { %vm113_vm10 = vcmp.eq.s32.totalorder %v71_v39, %v1785_v29 }
  0x94   :  { %vm1234_vm11 = vmpackc.low %vm114_vm9, %vm113_vm10 }
  0x95   :  { %1391 = vmatmul.mubr.msk.bf16.vlgmr.msra.gmra.mxu0 %vm1234_vm11, %v1652_v32  ;;  %v334_v40 = vpop.permute.xlu1 %333 }
  0x96   :  { %v80_v41 = vpop.permute.xlu0 %79  ;;  %vm372_vm15 = vcmp.eq.s32.totalorder %v334_v40, %v1785_v29  ;;  %1439 = vmatpush3.bf16.msra.mxu0 %v1554_v60 }
  0x97   :  { %vm116_vm13 = vcmp.eq.s32.totalorder %v80_v41, %v1785_v29  ;;  %1474 = vmatprep.subr.bf16.mxu0 %v1556_v63 }
  0x98   :  { %vm1236_vm14 = vmpackc.low %vm116_vm13, %vm115_vm12 }
  0x99   :  { %1394 = vmatprep.mubr.msk.bf16.mxu0 %vm1236_vm14, %v1652_v32  ;;  %v337_v42 = vpop.permute.xlu1 %336 }
  0x9a   :  { %vm373_vm0 = vcmp.eq.s32.totalorder %v337_v42, %v1785_v29  ;;  %v83_v43 = vpop.permute.xlu0 %82 }
  0x9b   :  { %vm1268_vm1 = vmpackc.low %vm373_vm0, %vm372_vm15  ;;  %vm117_vm2 = vcmp.eq.s32.totalorder %v83_v43, %v1785_v29 }
  0x9c   :  { %1426 = vmatprep.mubr.msk.bf16.mxu1 %vm1268_vm1, %v1652_v32  ;;  %vm378_vm1 = vcmp.eq.s32.totalorder %v352_v33, %v1785_v29 }
  0x9e   :  { %v86_v44 = vpop.permute.xlu1 %85  ;;  %v92_v46 = vpop.permute.xlu0 %91 }
  0x9f   :  { %vm118_vm3 = vcmp.eq.s32.totalorder %v86_v44, %v1785_v29  ;;  %vm120_vm8 = vcmp.eq.s32.totalorder %v92_v46, %v1785_v29 }
  0xa0   :  { %vm1238_vm4 = vmpackc.low %vm118_vm3, %vm117_vm2 }
  0xa1   :  { %1395 = vmatmul.mubr.msk.bf16.gmra.mxu0 %vm1238_vm4, %v1652_v32 }
  0xa2   :  { %v95_v50 = vpop.permute.xlu0 %94 }
  0xa3   :  { %v343_v45 = vpop.permute.xlu1 %342  ;;  %vm121_vm14 = vcmp.eq.s32.totalorder %v95_v50, %v1785_v29 }
  0xa4   :  { %vm375_vm6 = vcmp.eq.s32.totalorder %v343_v45, %v1785_v29 }
  0xa5   :  { %vm1270_vm7 = vmpackc.low %vm375_vm6, %vm374_vm5 }
  0xa6   :  { %1427 = vmatmul.mubr.msk.bf16.gmra.mxu1 %vm1270_vm7, %v1652_v32  ;;  %v104_v53 = vpop.permute.xlu0 %103 }
  0xa7   :  { %vm124_vm4 = vcmp.eq.s32.totalorder %v104_v53, %v1785_v29  ;;  %v1561_v53 = vld [vmem:[%s2053_s4 + $0x10] sm:$0xff]  }
  0xa8   :  { %v89_v47 = vpop.permute.xlu1 %88 }
  0xa9   :  { %vm119_vm9 = vcmp.eq.s32.totalorder %v89_v47, %v1785_v29  ;;  %v1559_v47 = vld [vmem:[%s2053_s4 + $0x20] sm:$0xff]  }
  0xaa   :  { %vm1240_vm10 = vmpackc.low %vm120_vm8, %vm119_vm9  ;;  %v107_v57 = vpop.permute.xlu0 %106 }
  0xab   :  { %1398 = vmatprep.mubr.msk.bf16.mxu0 %vm1240_vm10, %v1652_v32  ;;  %vm125_vm10 = vcmp.eq.s32.totalorder %v107_v57, %v1785_v29 }
  0xad   :  { %v346_v48 = vpop.permute.xlu1 %345 }
  0xae   :  { %vm376_vm11 = vcmp.eq.s32.totalorder %v346_v48, %v1785_v29 }
  0xaf   :  { %v364_v59 = vpop.permute.xlu0 %363 }
  0xb1   :  { %v349_v49 = vpop.permute.xlu1 %348 }
  0xb2   :  { %vm377_vm12 = vcmp.eq.s32.totalorder %v349_v49, %v1785_v29 }
  0xb3   :  { %vm1272_vm13 = vmpackc.low %vm377_vm12, %vm376_vm11 }
  0xb4   :  { %1430 = vmatprep.mubr.msk.bf16.mxu1 %vm1272_vm13, %v1652_v32  ;;  %vm382_vm13 = vcmp.eq.s32.totalorder %v364_v59, %v1785_v29 }
  0xb6   :  { %v98_v51 = vpop.permute.xlu1 %97 }
  0xb7   :  { %vm122_vm15 = vcmp.eq.s32.totalorder %v98_v51, %v1785_v29  ;;  %v1560_v51 = vld [vmem:[%s2053_s4 + $0x18] sm:$0xff]  }
  0xb8   :  { %vm1242_vm0 = vmpackc.low %vm122_vm15, %vm121_vm14 }
  0xb9   :  { %1399 = vmatmul.mubr.msk.bf16.gmra.mxu0 %vm1242_vm0, %v1652_v32  ;;  %vm535_vm0 = vcmask 130048  }
  0xbb   :  { %v355_v52 = vpop.permute.xlu1 %354 }
  0xbc   :  { %vm379_vm2 = vcmp.eq.s32.totalorder %v355_v52, %v1785_v29 }
  0xbd   :  { %vm1274_vm3 = vmpackc.low %vm379_vm2, %vm378_vm1  ;;  %vm999_vm1 = vcmp.lt.s32.totalorder %v1785_v29, 49 }
  0xbe   :  { %1431 = vmatmul.mubr.msk.bf16.gmra.mxu1 %vm1274_vm3, %v1652_v32 }
  0xc0   :  { %v101_v54 = vpop.permute.xlu1 %100 }
  0xc1   :  { %vm123_vm5 = vcmp.eq.s32.totalorder %v101_v54, %v1785_v29  ;;  %v1562_v54 = vld [vmem:[%s2053_s4 + $0x8] sm:$0xff]  }
  0xc2   :  { %vm1244_vm6 = vmpackc.low %vm124_vm4, %vm123_vm5 }
  0xc3   :  { %1402 = vmatprep.mubr.msk.bf16.mxu0 %vm1244_vm6, %v1652_v32 }
  0xc5   :  { %v358_v55 = vpop.permute.xlu1 %357 }
  0xc6   :  { %vm380_vm7 = vcmp.eq.s32.totalorder %v358_v55, %v1785_v29  ;;  %v1563_v55 = vld [vmem:[%s2053_s4] sm:$0xff]  }
  0xc9   :  { %v361_v56 = vpop.permute.xlu1 %360 }
  0xca   :  { %vm381_vm8 = vcmp.eq.s32.totalorder %v361_v56, %v1785_v29 }
  0xcb   :  { %vm1276_vm9 = vmpackc.low %vm381_vm8, %vm380_vm7 }
  0xcc   :  { %1434 = vmatprep.mubr.msk.bf16.mxu1 %vm1276_vm9, %v1652_v32 }
  0xce   :  { %v110_v58 = vpop.permute.xlu1 %109 }
  0xcf   :  { %vm126_vm11 = vcmp.eq.s32.totalorder %v110_v58, %v1785_v29 }
  0xd0   :  { %vm1246_vm12 = vmpackc.low %vm126_vm11, %vm125_vm10 }
  0xd1   :  { %1403 = vmatmul.mubr.msk.bf16.gmra.mxu0 %vm1246_vm12, %v1652_v32 }
  0xd3   :  { %v367_v61 = vpop.permute.xlu1 %366 }
  0xd4   :  { %vm383_vm14 = vcmp.eq.s32.totalorder %v367_v61, %v1785_v29 }
  0xd5   :  { %vm1278_vm15 = vmpackc.low %vm383_vm14, %vm382_vm13 }
  0xd6   :  { %1435 = vmatmul.mubr.msk.bf16.gmra.mxu1 %vm1278_vm15, %v1652_v32 }
 0x14e   :  { %v1424_v0 = vpop.f32.mrf.mxu1 }
 0x150   :  { %v458_v1 = vpop.f32.mrf.mxu1 }
 0x152   :  { %v1425_v2 = vpop.f32.mrf.mxu1 }
 0x153   :  { %v522_v6 = vpack.c.bf16 %v1425_v2, %v1424_v0  ;;  %v1884_v0 = vld [vmem:[%s2052_s3] ss:$0 sm:$0xff] }
 0x154   :  { %v461_v3 = vpop.f32.mrf.mxu1 }
 0x155   :  { %v521_v4 = vpack.c.bf16 %v461_v3, %v458_v1  ;;  %v1392_v5 = vpop.f32.mrf.mxu0 }
 0x157   :  { %v249_v8 = vpop.f32.mrf.mxu0  ;;  %1440 = vmatprep.mubr.msk.bf16.mxu0 %vm535_vm0, %v521_v4 }
 0x158   :  { %1441 = vmatmul.mubr.msk.bf16.vlgmr.msra.gmra.mxu0 %vm535_vm0, %v522_v6 }
 0x159   :  { %v1393_v9 = vpop.f32.mrf.mxu0  ;;  %1475 = vmatpush3.bf16.msra.mxu0 %v1556_v63 }
 0x15a   :  { %1476 = vmatprep.subr.bf16.mxu0 %v1557_v7  ;;  %v313_v13 = vpack.c.bf16 %v1393_v9, %v1392_v5 }
 0x15b   :  { %v252_v11 = vpop.f32.mrf.mxu0 }
 0x15c   :  { %v312_v12 = vpack.c.bf16 %v252_v11, %v249_v8 }
 0x15d   :  { %1477 = vmatpush3.bf16.msra.mxu0 %v1557_v7 }
 0x15e   :  { %1458 = vmatprep.mubr.msk.bf16.mxu1 %vm535_vm0, %v312_v12  ;;  %1478 = vmatprep.subr.bf16.mxu0 %v1558_v10 }
 0x15f   :  { %1459 = vmatmul.mubr.msk.bf16.vlgmr.msra.gmra.mxu1 %vm535_vm0, %v313_v13 }
 0x160   :  { %1514 = vmatpush3.bf16.msra.mxu1 %v1556_v63 }
 0x161   :  { %v1396_v14 = vpop.f32.mrf.mxu0  ;;  %1479 = vmatpush3.bf16.msra.mxu0 %v1558_v10  ;;  %1507 = vmatprep.subr.bf16.mxu1 %v1557_v7 }
 0x162   :  { %1480 = vmatprep.subr.bf16.mxu0 %v1559_v47 }
 0x163   :  { %v265_v15 = vpop.f32.mrf.mxu0 }
 0x164   :  { %1515 = vmatpush3.bf16.msra.mxu1 %v1557_v7 }
 0x165   :  { %v1397_v16 = vpop.f32.mrf.mxu0  ;;  %1508 = vmatprep.subr.bf16.mxu1 %v1558_v10  ;;  %1481 = vmatpush3.bf16.msra.mxu0 %v1559_v47 }
 0x166   :  { %v1428_v17 = vpop.f32.mrf.mxu1  ;;  %v315_v21 = vpack.c.bf16 %v1397_v16, %v1396_v14  ;;  %1482 = vmatprep.subr.bf16.mxu0 %v1560_v51 }
 0x167   :  { %v268_v18 = vpop.f32.mrf.mxu0 }
 0x168   :  { %v314_v19 = vpack.c.bf16 %v268_v18, %v265_v15  ;;  %v474_v20 = vpop.f32.mrf.mxu1  ;;  %1516 = vmatpush3.bf16.msra.mxu1 %v1558_v10 }
 0x169   :  { %1509 = vmatprep.subr.bf16.mxu1 %v1559_v47  ;;  %1483 = vmatpush3.bf16.msra.mxu0 %v1560_v51 }
 0x16a   :  { %v1429_v22 = vpop.f32.mrf.mxu1  ;;  %1462 = vmatprep.mubr.msk.bf16.mxu1 %vm535_vm0, %v314_v19  ;;  %1484 = vmatprep.subr.bf16.mxu0 %v1561_v53 }
 0x16b   :  { %1463 = vmatmul.mubr.msk.bf16.gmra.mxu1 %vm535_vm0, %v315_v21  ;;  %v524_v25 = vpack.c.bf16 %v1429_v22, %v1428_v17 }
 0x16c   :  { %v477_v23 = vpop.f32.mrf.mxu1  ;;  %1517 = vmatpush3.bf16.msra.mxu1 %v1559_v47 }
 0x16d   :  { %v523_v24 = vpack.c.bf16 %v477_v23, %v474_v20  ;;  %1510 = vmatprep.subr.bf16.mxu1 %v1560_v51  ;;  %1485 = vmatpush3.bf16.msra.mxu0 %v1561_v53 }
 0x16e   :  { %1486 = vmatprep.subr.bf16.mxu0 %v1562_v54 }
 0x16f   :  { %1444 = vmatprep.mubr.msk.bf16.mxu0 %vm535_vm0, %v523_v24 }
 0x170   :  { %1445 = vmatmul.mubr.msk.bf16.gmra.mxu0 %vm535_vm0, %v524_v25  ;;  %1518 = vmatpush3.bf16.msra.mxu1 %v1560_v51 }
 0x171   :  { %1511 = vmatprep.subr.bf16.mxu1 %v1561_v53  ;;  %1487 = vmatpush3.bf16.msra.mxu0 %v1562_v54 }
 0x172   :  { %1488 = vmatprep.subr.bf16.mxu0 %v1563_v55 }
 0x174   :  { %1519 = vmatpush3.bf16.msra.mxu1 %v1561_v53 }
 0x175   :  { %1512 = vmatprep.subr.bf16.mxu1 %v1562_v54  ;;  %1489 = vmatpush3.bf16.msra.mxu0 %v1563_v55 }
 0x178   :  { %1520 = vmatpush3.bf16.msra.mxu1 %v1562_v54 }
 0x179   :  { %v1400_v26 = vpop.f32.mrf.mxu0  ;;  %1513 = vmatprep.subr.bf16.mxu1 %v1563_v55 }
 0x17b   :  { %v281_v27 = vpop.f32.mrf.mxu0 }
 0x17c   :  { %1521 = vmatpush3.bf16.msra.mxu1 %v1563_v55 }
 0x17d   :  { %v1401_v28 = vpop.f32.mrf.mxu0 }
 0x17e   :  { %v1432_v30 = vpop.f32.mrf.mxu1  ;;  %v317_v34 = vpack.c.bf16 %v1401_v28, %v1400_v26 }
 0x17f   :  { %v284_v31 = vpop.f32.mrf.mxu0 }
 0x180   :  { %v316_v32 = vpack.c.bf16 %v284_v31, %v281_v27  ;;  %v490_v33 = vpop.f32.mrf.mxu1 }
 0x182   :  { %v1433_v35 = vpop.f32.mrf.mxu1  ;;  %1466 = vmatprep.mubr.msk.bf16.mxu1 %vm535_vm0, %v316_v32 }
 0x183   :  { %1467 = vmatmul.mubr.msk.bf16.gmra.mxu1 %vm535_vm0, %v317_v34  ;;  %v526_v38 = vpack.c.bf16 %v1433_v35, %v1432_v30 }
 0x184   :  { %v493_v36 = vpop.f32.mrf.mxu1 }
 0x185   :  { %v525_v37 = vpack.c.bf16 %v493_v36, %v490_v33 }
 0x187   :  { %1448 = vmatprep.mubr.msk.bf16.mxu0 %vm535_vm0, %v525_v37 }
 0x188   :  { %1449 = vmatmul.mubr.msk.bf16.gmra.mxu0 %vm535_vm0, %v526_v38 }
 0x191   :  { %v1404_v39 = vpop.f32.mrf.mxu0 }
 0x193   :  { %v297_v40 = vpop.f32.mrf.mxu0 }
 0x195   :  { %v1405_v41 = vpop.f32.mrf.mxu0 }
 0x196   :  { %v1436_v42 = vpop.f32.mrf.mxu1  ;;  %v319_v46 = vpack.c.bf16 %v1405_v41, %v1404_v39 }
 0x197   :  { %v300_v43 = vpop.f32.mrf.mxu0 }
 0x198   :  { %v318_v44 = vpack.c.bf16 %v300_v43, %v297_v40  ;;  %v506_v45 = vpop.f32.mrf.mxu1 }
 0x19a   :  { %v1437_v48 = vpop.f32.mrf.mxu1  ;;  %1470 = vmatprep.mubr.msk.bf16.mxu1 %vm535_vm0, %v318_v44 }
 0x19b   :  { %1471 = vmatmul.mubr.msk.bf16.gmra.mxu1 %vm535_vm0, %v319_v46  ;;  %v528_v52 = vpack.c.bf16 %v1437_v48, %v1436_v42 }
 0x19c   :  { %v509_v49 = vpop.f32.mrf.mxu1 }
 0x19d   :  { %v527_v50 = vpack.c.bf16 %v509_v49, %v506_v45 }
 0x19f   :  { %1452 = vmatprep.mubr.msk.bf16.mxu0 %vm535_vm0, %v527_v50 }
 0x1a0   :  { %1453 = vmatmul.mubr.msk.bf16.gmra.mxu0 %vm535_vm0, %v528_v52 }
 0x218   :  { %v1442_v56 = vpop.f32.mrf.mxu0 }
 0x21a   :  { %v594_v57 = vpop.f32.mrf.mxu0 }
 0x21c   :  { %v1443_v59 = vpop.f32.mrf.mxu0 }
 0x21e   :  { %v597_v2 = vpop.f32.mrf.mxu0 }
 0x21f   :  { %v1460_v58 = vpop.f32.mrf.mxu1 }
 0x220   :  { %v730_v62 = vadd.f32 %v1460_v58, %v1442_v56 }
 0x221   :  { %v721_v60 = vpop.f32.mrf.mxu1 }
 0x222   :  { %v722_v61 = vadd.f32 %v721_v60, %v594_v57  ;;  %v793_v7 = vadd.f32 %v1884_v0, %v730_v62 }
 0x223   :  { %v1461_v63 = vpop.f32.mrf.mxu1 }
 0x224   :  { %v733_v1 = vadd.f32 %v1461_v63, %v1443_v59  ;;  %v791_v4 = vadd.f32 %v1884_v0, %v722_v61  ;;  %v809_v12 = vmax.f32 %v793_v7, 0.0 }
 0x225   :  { %v724_v3 = vpop.f32.mrf.mxu1 }
 0x226   :  { %v794_v5 = vadd.f32 %v1884_v0, %v733_v1  ;;  %v725_v6 = vadd.f32 %v724_v3, %v597_v2  ;;  %v807_v10 = vmax.f32 %v791_v4, 0.0 }
 0x228   :  { %v792_v8 = vadd.f32 %v1884_v0, %v725_v6  ;;  %v810_v9 = vmax.f32 %v794_v5, 0.0 }
 0x22a   :  { %v808_v11 = vmax.f32 %v792_v8, 0.0  ;;  %v824_v15 = vpack.c.bf16 %v810_v9, %v809_v12 }
 0x22b   :  { %v1464_v13 = vpop.f32.mrf.mxu1 }
 0x22c   :  { %v823_v14 = vpack.c.bf16 %v808_v11, %v807_v10 }
 0x22d   :  { %v737_v16 = vpop.f32.mrf.mxu1 }
 0x22e   :  { %1490 = vmatprep.mubr.bf16.mxu0 %v823_v14 }
 0x22f   :  { %1491 = vmatmul.mubr.bf16.vlgmr.msra.gmra.mxu0 %v824_v15  ;;  %v1465_v18 = vpop.f32.mrf.mxu1 }
 0x230   :  { %v1446_v17 = vpop.f32.mrf.mxu0 }
 0x231   :  { %v746_v21 = vadd.f32 %v1464_v13, %v1446_v17  ;;  %v740_v24 = vpop.f32.mrf.mxu1 }
 0x232   :  { %v610_v19 = vpop.f32.mrf.mxu0 }
 0x233   :  { %v738_v20 = vadd.f32 %v737_v16, %v610_v19  ;;  %v797_v30 = vadd.f32 %v1884_v0, %v746_v21  ;;  %v1299_v19 = vld [vmem:[%s2054_s5] ss:$0 sm:$0xff]  ;;  %s1653_s5 = smov [#allocation2]  }
 0x234   :  { %v1447_v22 = vpop.f32.mrf.mxu0  ;;  %s1197_s15 = sshll.u32 %s1653_s5, 4  ;;  %s1198_s15 = int_to_ptr.vmem [resolvable:$true] %s1197_s15 }
 0x235   :  { %v749_v23 = vadd.f32 %v1465_v18, %v1447_v22  ;;  %v795_v26 = vadd.f32 %v1884_v0, %v738_v20  ;;  %v813_v35 = vmax.f32 %v797_v30, 0.0  ;;  %s1628_s16 = scalar_lea.vmem %s1198_s15, 2048  ;;  %p1633_p1 = scmp.lt.s32.totalorder %s1198_s15, %s1198_s15 }
 0x236   :  { %v613_v25 = vpop.f32.mrf.mxu0  ;;  %p1629_p0 = scmp.ne.s32.totalorder %s1198_s15, %s1628_s16  ;;  %p1634_p2 = scmp.lt.s32.totalorder %s1628_s16, %s1628_s16 }
 0x237   :  { %v798_v27 = vadd.f32 %v1884_v0, %v749_v23  ;;  %v741_v28 = vadd.f32 %v740_v24, %v613_v25  ;;  %v811_v33 = vmax.f32 %v795_v26, 0.0 }
 0x238   :  { %p1635_p3 = por %p1634_p2, %p1633_p1 }
 0x239   :  { %v796_v31 = vadd.f32 %v1884_v0, %v741_v28  ;;  %v814_v32 = vmax.f32 %v798_v27, 0.0 }
 0x23a   :  { %p1636_p4 = pnand %p1635_p3, %p1629_p0 }
 0x23b   :  { %v812_v34 = vmax.f32 %v796_v31, 0.0  ;;  %v826_v37 = vpack.c.bf16 %v814_v32, %v813_v35 }
 0x23d   :  { %v825_v36 = vpack.c.bf16 %v812_v34, %v811_v33 }
 0x23f   :  { %1494 = vmatprep.mubr.bf16.mxu0 %v825_v36 }
 0x240   :  { %1495 = vmatmul.mubr.bf16.gmra.mxu0 %v826_v37 }
 0x243   :  { %v1468_v38 = vpop.f32.mrf.mxu1 }
 0x245   :  { %v753_v39 = vpop.f32.mrf.mxu1 }
 0x247   :  { %v1469_v41 = vpop.f32.mrf.mxu1 }
 0x248   :  { %v1450_v40 = vpop.f32.mrf.mxu0 }
 0x249   :  { %v762_v44 = vadd.f32 %v1468_v38, %v1450_v40  ;;  %v756_v47 = vpop.f32.mrf.mxu1 }
 0x24a   :  { %v626_v42 = vpop.f32.mrf.mxu0 }
 0x24b   :  { %v754_v43 = vadd.f32 %v753_v39, %v626_v42  ;;  %v801_v52 = vadd.f32 %v1884_v0, %v762_v44 }
 0x24c   :  { %v1451_v45 = vpop.f32.mrf.mxu0 }
 0x24d   :  { %v765_v46 = vadd.f32 %v1469_v41, %v1451_v45  ;;  %v799_v49 = vadd.f32 %v1884_v0, %v754_v43  ;;  %v817_v57 = vmax.f32 %v801_v52, 0.0 }
 0x24e   :  { %v629_v48 = vpop.f32.mrf.mxu0 }
 0x24f   :  { %v802_v50 = vadd.f32 %v1884_v0, %v765_v46  ;;  %v757_v51 = vadd.f32 %v756_v47, %v629_v48  ;;  %v815_v55 = vmax.f32 %v799_v49, 0.0 }
 0x251   :  { %v800_v53 = vadd.f32 %v1884_v0, %v757_v51  ;;  %v818_v54 = vmax.f32 %v802_v50, 0.0 }
 0x253   :  { %v816_v56 = vmax.f32 %v800_v53, 0.0  ;;  %v828_v59 = vpack.c.bf16 %v818_v54, %v817_v57 }
 0x255   :  { %v827_v58 = vpack.c.bf16 %v816_v56, %v815_v55 }
 0x257   :  { %1498 = vmatprep.mubr.bf16.mxu1 %v827_v58 }
 0x258   :  { %1499 = vmatmul.mubr.bf16.vlgmr.msra.gmra.mxu1 %v828_v59 }
 0x25b   :  { %v1472_v60 = vpop.f32.mrf.mxu1 }
 0x25d   :  { %v769_v61 = vpop.f32.mrf.mxu1 }
 0x25f   :  { %v1473_v63 = vpop.f32.mrf.mxu1 }
 0x260   :  { %v1454_v62 = vpop.f32.mrf.mxu0 }
 0x261   :  { %v778_v3 = vadd.f32 %v1472_v60, %v1454_v62  ;;  %v772_v6 = vpop.f32.mrf.mxu1 }
 0x262   :  { %v642_v1 = vpop.f32.mrf.mxu0 }
 0x263   :  { %v770_v2 = vadd.f32 %v769_v61, %v642_v1  ;;  %v805_v11 = vadd.f32 %v1884_v0, %v778_v3 }
 0x264   :  { %v1455_v4 = vpop.f32.mrf.mxu0 }
 0x265   :  { %v781_v5 = vadd.f32 %v1473_v63, %v1455_v4  ;;  %v803_v8 = vadd.f32 %v1884_v0, %v770_v2  ;;  %v821_v16 = vmax.f32 %v805_v11, 0.0 }
 0x266   :  { %v645_v7 = vpop.f32.mrf.mxu0 }
 0x267   :  { %v806_v9 = vadd.f32 %v1884_v0, %v781_v5  ;;  %v773_v10 = vadd.f32 %v772_v6, %v645_v7  ;;  %v819_v14 = vmax.f32 %v803_v8, 0.0 }
 0x269   :  { %v804_v12 = vadd.f32 %v1884_v0, %v773_v10  ;;  %v822_v13 = vmax.f32 %v806_v9, 0.0 }
 0x26b   :  { %v820_v15 = vmax.f32 %v804_v12, 0.0  ;;  %v830_v18 = vpack.c.bf16 %v822_v13, %v821_v16 }
 0x26d   :  { %v829_v17 = vpack.c.bf16 %v820_v15, %v819_v14 }
 0x26f   :  { %1502 = vmatprep.mubr.bf16.mxu1 %v829_v17 }
 0x270   :  { %1503 = vmatmul.mubr.bf16.gmra.mxu1 %v830_v18 }
 0x2ef   :  { %v1492_v20 = vpop.f32.mrf.mxu0 }
 0x2f0   :  { %v945_v21 = vadd.f32 %v1492_v20, %v1299_v19 }
 0x2f1   :  { %v936_v22 = vpop.f32.mrf.mxu0 }
 0x2f2   :  { %v937_v23 = vadd.f32 %v1299_v19, %v936_v22  ;;  %v1002_v0 = vsel %vm999_vm1, %v945_v21, -1e+30 }
 0x2f3   :  { %1020 = vmax.xlane.f32.xlu0 %v1002_v0  ;;  %v1493_v24 = vpop.f32.mrf.mxu0 }
 0x2f4   :  { %v948_v25 = vadd.f32 %v1493_v24, %v1299_v19  ;;  %v1000_v26 = vsel %vm999_vm1, %v937_v23, -1e+30 }
 0x2f5   :  { %v939_v27 = vpop.f32.mrf.mxu0  ;;  %1016 = vmax.xlane.f32.xlu1 %v1000_v26 }
 0x2f6   :  { %v940_v28 = vadd.f32 %v1299_v19, %v939_v27  ;;  %v1003_v31 = vsel %vm999_vm1, %v948_v25, -1e+30 }
 0x2f8   :  { %v1001_v30 = vsel %vm999_vm1, %v940_v28, -1e+30 }
 0x2f9   :  { %1018 = vmax.xlane.f32.xlu0 %v1001_v30  ;;  %1022 = vmax.xlane.f32.xlu1 %v1003_v31 }
 0x300   :  { %v1496_v32 = vpop.f32.mrf.mxu0 }
 0x301   :  { %v961_v33 = vadd.f32 %v1496_v32, %v1299_v19 }
 0x302   :  { %v952_v34 = vpop.f32.mrf.mxu0 }
 0x303   :  { %v953_v35 = vadd.f32 %v1299_v19, %v952_v34  ;;  %v1006_v36 = vsel %vm999_vm1, %v961_v33, -1e+30 }
 0x304   :  { %v1497_v37 = vpop.f32.mrf.mxu0  ;;  %1028 = vmax.xlane.f32.xlu0 %v1006_v36 }
 0x305   :  { %v964_v38 = vadd.f32 %v1497_v37, %v1299_v19  ;;  %v1918_v41 = vsel %vm999_vm1, %v953_v35, -1e+30 }
 0x306   :  { %v955_v39 = vpop.f32.mrf.mxu0 }
 0x307   :  { %v956_v40 = vadd.f32 %v1299_v19, %v955_v39  ;;  %v1922_v42 = vsel %vm999_vm1, %v964_v38, -1e+30 }
 0x308   :  { %1024 = vmax.xlane.f32.xlu0 %v1918_v41  ;;  %1030 = vmax.xlane.f32.xlu1 %v1922_v42 }
 0x309   :  { %v1928_v43 = vsel %vm999_vm1, %v956_v40, -1e+30 }
 0x30c   :  { %1026 = vmax.xlane.f32.xlu1 %v1928_v43 }
 0x318   :  { %v1500_v44 = vpop.f32.mrf.mxu1 }
 0x319   :  { %v977_v45 = vadd.f32 %v1500_v44, %v1299_v19 }
 0x31a   :  { %v968_v46 = vpop.f32.mrf.mxu1 }
 0x31b   :  { %v969_v47 = vadd.f32 %v1299_v19, %v968_v46  ;;  %v1933_v48 = vsel %vm999_vm1, %v977_v45, -1e+30 }
 0x31c   :  { %v1501_v49 = vpop.f32.mrf.mxu1  ;;  %1036 = vmax.xlane.f32.xlu0 %v1933_v48 }
 0x31d   :  { %v980_v50 = vadd.f32 %v1501_v49, %v1299_v19  ;;  %v1938_v53 = vsel %vm999_vm1, %v969_v47, -1e+30 }
 0x31e   :  { %v971_v51 = vpop.f32.mrf.mxu1 }
 0x31f   :  { %v972_v52 = vadd.f32 %v1299_v19, %v971_v51  ;;  %v1942_v54 = vsel %vm999_vm1, %v980_v50, -1e+30 }
 0x320   :  { %1032 = vmax.xlane.f32.xlu0 %v1938_v53  ;;  %1038 = vmax.xlane.f32.xlu1 %v1942_v54 }
 0x321   :  { %v1948_v55 = vsel %vm999_vm1, %v972_v52, -1e+30 }
 0x324   :  { %1034 = vmax.xlane.f32.xlu1 %v1948_v55 }
 0x330   :  { %v1504_v56 = vpop.f32.mrf.mxu1 }
 0x331   :  { %v993_v60 = vadd.f32 %v1504_v56, %v1299_v19 }
 0x332   :  { %v984_v57 = vpop.f32.mrf.mxu1 }
 0x333   :  { %v985_v58 = vadd.f32 %v1299_v19, %v984_v57  ;;  %v1962_v3 = vsel %vm999_vm1, %v993_v60, -1e+30 }
 0x334   :  { %v1505_v59 = vpop.f32.mrf.mxu1 }
 0x335   :  { %v1953_v61 = vsel %vm999_vm1, %v985_v58, -1e+30  ;;  %v996_v1 = vadd.f32 %v1505_v59, %v1299_v19 }
 0x336   :  { %v987_v62 = vpop.f32.mrf.mxu1  ;;  %1040 = vmax.xlane.f32.xlu0 %v1953_v61 }
 0x337   :  { %v988_v63 = vadd.f32 %v1299_v19, %v987_v62  ;;  %v1968_v4 = vsel %vm999_vm1, %v996_v1, -1e+30 }
 0x339   :  { %v1958_v2 = vsel %vm999_vm1, %v988_v63, -1e+30 }
 0x33a   :  { %1042 = vmax.xlane.f32.xlu1 %v1958_v2  ;;  %1044 = vmax.xlane.f32.xlu0 %v1962_v3 }
 0x33e   :  { %1046 = vmax.xlane.f32.xlu1 %v1968_v4 }
 0x37c   :  { %v1021_v5 = vpop.xlane.xlu0 %1020 }
 0x37d   :  { %v1971_v6 = vsub.f32 %v1002_v0, %v1021_v5 }
 0x37e   :  { %v1017_v7 = vpop.xlane.xlu1 %1016 }
 0x37f   :  { %v1068_v8 = vmul.f32 1.442695, %v1971_v6  ;;  %v1974_v9 = vsub.f32 %v1000_v26, %v1017_v7 }
 0x381   :  { %1564 = vpow2.f32 %v1068_v8  ;;  %v1064_v10 = vmul.f32 1.442695, %v1974_v9 }
 0x382   :  { %v1019_v11 = vpop.xlane.xlu0 %1018  ;;  %v1023_v12 = vpop.xlane.xlu1 %1022 }
 0x383   :  { %v1977_v13 = vsub.f32 %v1003_v31, %v1023_v12  ;;  %v1979_v29 = vsub.f32 %v1001_v30, %v1019_v11  ;;  %1566 = vpow2.f32 %v1064_v10 }
 0x385   :  { %v1070_v14 = vmul.f32 1.442695, %v1977_v13  ;;  %v1066_v15 = vmul.f32 1.442695, %v1979_v29 }
 0x387   :  { %1568 = vpow2.f32 %v1070_v14 }
 0x388   :  { %1570 = vpow2.f32 %v1066_v15 }
 0x38d   :  { %v1029_v16 = vpop.xlane.xlu0 %1028 }
 0x38e   :  { %v1565_v17 = vpop.eup %1564  ;;  %v1983_v18 = vsub.f32 %v1006_v36, %v1029_v16 }
 0x38f   :  { %1100 = vadd.xlane.f32.xlu0 %v1565_v17 }
 0x390   :  { %v1076_v19 = vmul.f32 1.442695, %v1983_v18  ;;  %v1567_v22 = vpop.eup %1566 }
 0x391   :  { %v1025_v20 = vpop.xlane.xlu0 %1024  ;;  %v1031_v21 = vpop.xlane.xlu1 %1030 }
 0x392   :  { %1572 = vpow2.f32 %v1076_v19  ;;  %v1987_v23 = vsub.f32 %v1918_v41, %v1025_v20  ;;  %v1990_v0 = vsub.f32 %v1922_v42, %v1031_v21 }
 0x393   :  { %1096 = vadd.xlane.f32.xlu0 %v1567_v22 }
 0x394   :  { %v1072_v24 = vmul.f32 1.442695, %v1987_v23  ;;  %v1078_v25 = vmul.f32 1.442695, %v1990_v0  ;;  %v1569_v26 = vpop.eup %1568 }
 0x395   :  { %v1027_v27 = vpop.xlane.xlu1 %1026  ;;  %1102 = vadd.xlane.f32.xlu1 %v1569_v26  ;;  %v1571_v31 = vpop.eup %1570 }
 0x396   :  { %1574 = vpow2.f32 %v1072_v24  ;;  %v1995_v28 = vsub.f32 %v1928_v43, %v1027_v27 }
 0x397   :  { %1576 = vpow2.f32 %v1078_v25 }
 0x398   :  { %v1074_v30 = vmul.f32 1.442695, %v1995_v28 }
 0x399   :  { %1098 = vadd.xlane.f32.xlu1 %v1571_v31 }
 0x39a   :  { %1578 = vpow2.f32 %v1074_v30 }
 0x39f   :  { %v1573_v32 = vpop.eup %1572 }
 0x3a0   :  { %1108 = vadd.xlane.f32.xlu0 %v1573_v32 }
 0x3a3   :  { %v1575_v33 = vpop.eup %1574 }
 0x3a4   :  { %v1577_v34 = vpop.eup %1576  ;;  %1104 = vadd.xlane.f32.xlu0 %v1575_v33 }
 0x3a5   :  { %1110 = vadd.xlane.f32.xlu1 %v1577_v34  ;;  %v1037_v35 = vpop.xlane.xlu0 %1036 }
 0x3a6   :  { %v1999_v36 = vsub.f32 %v1933_v48, %v1037_v35 }
 0x3a7   :  { %v1579_v37 = vpop.eup %1578 }
 0x3a8   :  { %v1084_v38 = vmul.f32 1.442695, %v1999_v36 }
 0x3a9   :  { %1106 = vadd.xlane.f32.xlu1 %v1579_v37  ;;  %v1033_v39 = vpop.xlane.xlu0 %1032  ;;  %v1039_v40 = vpop.xlane.xlu1 %1038 }
 0x3aa   :  { %1580 = vpow2.f32 %v1084_v38  ;;  %v2003_v41 = vsub.f32 %v1938_v53, %v1033_v39  ;;  %v2006_v42 = vsub.f32 %v1942_v54, %v1039_v40 }
 0x3ac   :  { %v1080_v43 = vmul.f32 1.442695, %v2003_v41  ;;  %v1086_v44 = vmul.f32 1.442695, %v2006_v42 }
 0x3ad   :  { %v1035_v45 = vpop.xlane.xlu1 %1034 }
 0x3ae   :  { %1582 = vpow2.f32 %v1080_v43  ;;  %v2011_v46 = vsub.f32 %v1948_v55, %v1035_v45 }
 0x3af   :  { %1584 = vpow2.f32 %v1086_v44 }
 0x3b0   :  { %v1082_v47 = vmul.f32 1.442695, %v2011_v46 }
 0x3b2   :  { %1586 = vpow2.f32 %v1082_v47 }
 0x3b7   :  { %v1581_v48 = vpop.eup %1580 }
 0x3b8   :  { %1116 = vadd.xlane.f32.xlu0 %v1581_v48 }
 0x3bb   :  { %v1583_v49 = vpop.eup %1582 }
 0x3bc   :  { %v1585_v50 = vpop.eup %1584  ;;  %1112 = vadd.xlane.f32.xlu0 %v1583_v49 }
 0x3bd   :  { %1118 = vadd.xlane.f32.xlu1 %v1585_v50 }
 0x3bf   :  { %v1587_v51 = vpop.eup %1586  ;;  %v1041_v52 = vpop.xlane.xlu0 %1040 }
 0x3c0   :  { %v2015_v53 = vsub.f32 %v1953_v61, %v1041_v52 }
 0x3c1   :  { %1114 = vadd.xlane.f32.xlu1 %v1587_v51 }
 0x3c2   :  { %v1088_v54 = vmul.f32 1.442695, %v2015_v53 }
 0x3c3   :  { %v1043_v55 = vpop.xlane.xlu1 %1042  ;;  %v1045_v56 = vpop.xlane.xlu0 %1044 }
 0x3c4   :  { %1588 = vpow2.f32 %v1088_v54  ;;  %v2019_v57 = vsub.f32 %v1958_v2, %v1043_v55  ;;  %v2022_v58 = vsub.f32 %v1962_v3, %v1045_v56 }
 0x3c6   :  { %v1090_v59 = vmul.f32 1.442695, %v2019_v57  ;;  %v1092_v60 = vmul.f32 1.442695, %v2022_v58 }
 0x3c7   :  { %v1047_v62 = vpop.xlane.xlu1 %1046 }
 0x3c8   :  { %1590 = vpow2.f32 %v1090_v59  ;;  %v2027_v61 = vsub.f32 %v1968_v4, %v1047_v62 }
 0x3c9   :  { %1592 = vpow2.f32 %v1092_v60 }
 0x3ca   :  { %v1094_v63 = vmul.f32 1.442695, %v2027_v61 }
 0x3cc   :  { %1594 = vpow2.f32 %v1094_v63 }
 0x3d1   :  { %v1589_v1 = vpop.eup %1588 }
 0x3d2   :  { %1120 = vadd.xlane.f32.xlu0 %v1589_v1 }
 0x3d5   :  { %v1591_v2 = vpop.eup %1590 }
 0x3d6   :  { %v1593_v5 = vpop.eup %1592  ;;  %1122 = vadd.xlane.f32.xlu1 %v1591_v2 }
 0x3d7   :  { %1124 = vadd.xlane.f32.xlu0 %v1593_v5 }
 0x3d9   :  { %v1595_v3 = vpop.eup %1594 }
 0x3da   :  { %1126 = vadd.xlane.f32.xlu1 %v1595_v3 }
 0x418   :  { %v1101_v7 = vpop.xlane.xlu0 %1100 }
 0x419   :  { %1596 = vlog2.f32 %v1101_v7 }
 0x41c   :  { %v1097_v8 = vpop.xlane.xlu0 %1096 }
 0x41d   :  { %1598 = vlog2.f32 %v1097_v8 }
 0x41e   :  { %v1103_v10 = vpop.xlane.xlu1 %1102 }
 0x41f   :  { %1600 = vlog2.f32 %v1103_v10 }
 0x422   :  { %v1099_v4 = vpop.xlane.xlu1 %1098 }
 0x423   :  { %1602 = vlog2.f32 %v1099_v4 }
 0x426   :  { %v1597_v11 = vpop.eup %1596 }
 0x427   :  { %v1133_v12 = vmul.f32 0.6931472, %v1597_v11 }
 0x429   :  { %v1162_v14 = vsub.f32 %v1971_v6, %v1133_v12  ;;  %v1109_v15 = vpop.xlane.xlu0 %1108 }
 0x42a   :  { %v1599_v16 = vpop.eup %1598  ;;  %1604 = vlog2.f32 %v1109_v15 }
 0x42b   :  { %1178 = vst [vmem:[#allocation2 + $0x10] sm:$0xff] %v1162_v14  ;;  %v1129_v17 = vmul.f32 0.6931472, %v1599_v16 }
 0x42c   :  { %v1601_v19 = vpop.eup %1600 }
 0x42d   :  { %v1160_v20 = vsub.f32 %v1974_v9, %v1129_v17  ;;  %v1105_v21 = vpop.xlane.xlu0 %1104  ;;  %v1135_v22 = vmul.f32 0.6931472, %v1601_v19 }
 0x42e   :  { %v1111_v24 = vpop.xlane.xlu1 %1110  ;;  %1606 = vlog2.f32 %v1105_v21 }
 0x42f   :  { %1176 = vst [vmem:[#allocation2] sm:$0xff] %v1160_v20  ;;  %1608 = vlog2.f32 %v1111_v24  ;;  %v1163_v25 = vsub.f32 %v1977_v13, %v1135_v22 }
 0x430   :  { %v1603_v26 = vpop.eup %1602 }
 0x431   :  { %1179 = vst [vmem:[#allocation2 + $0x18] sm:$0xff] %v1163_v25  ;;  %v1131_v27 = vmul.f32 0.6931472, %v1603_v26 }
 0x432   :  { %v1107_v6 = vpop.xlane.xlu1 %1106 }
 0x433   :  { %1610 = vlog2.f32 %v1107_v6  ;;  %v1161_v30 = vsub.f32 %v1979_v29, %v1131_v27 }
 0x435   :  { %1177 = vst [vmem:[#allocation2 + $0x8] sm:$0xff] %v1161_v30 }
 0x437   :  { %v1605_v31 = vpop.eup %1604 }
 0x438   :  { %v1141_v32 = vmul.f32 0.6931472, %v1605_v31 }
 0x43a   :  { %v1166_v9 = vsub.f32 %v1983_v18, %v1141_v32 }
 0x43b   :  { %v1607_v33 = vpop.eup %1606 }
 0x43c   :  { %v1609_v34 = vpop.eup %1608  ;;  %1182 = vst [vmem:[#allocation2 + $0x30] sm:$0xff] %v1166_v9  ;;  %v1137_v35 = vmul.f32 0.6931472, %v1607_v33 }
 0x43d   :  { %v1143_v37 = vmul.f32 0.6931472, %v1609_v34 }
 0x43e   :  { %v1164_v38 = vsub.f32 %v1987_v23, %v1137_v35 }
 0x43f   :  { %v1167_v13 = vsub.f32 %v1990_v0, %v1143_v37 }
 0x440   :  { %v1611_v39 = vpop.eup %1610  ;;  %1180 = vst [vmem:[#allocation2 + $0x20] sm:$0xff] %v1164_v38 }
 0x441   :  { %1183 = vst [vmem:[#allocation2 + $0x38] sm:$0xff] %v1167_v13  ;;  %v1139_v40 = vmul.f32 0.6931472, %v1611_v39  ;;  %v1117_v43 = vpop.xlane.xlu0 %1116 }
 0x442   :  { %1612 = vlog2.f32 %v1117_v43 }
 0x443   :  { %v1165_v29 = vsub.f32 %v1995_v28, %v1139_v40 }
 0x445   :  { %1181 = vst [vmem:[#allocation2 + $0x28] sm:$0xff] %v1165_v29  ;;  %v1113_v44 = vpop.xlane.xlu0 %1112 }
 0x446   :  { %v1119_v18 = vpop.xlane.xlu1 %1118  ;;  %1614 = vlog2.f32 %v1113_v44 }
 0x447   :  { %1616 = vlog2.f32 %v1119_v18 }
 0x44a   :  { %v1115_v45 = vpop.xlane.xlu1 %1114 }
 0x44b   :  { %1618 = vlog2.f32 %v1115_v45 }
 0x44f   :  { %v1613_v47 = vpop.eup %1612 }
 0x450   :  { %v1149_v48 = vmul.f32 0.6931472, %v1613_v47 }
 0x452   :  { %v1170_v23 = vsub.f32 %v1999_v36, %v1149_v48 }
 0x453   :  { %v1615_v0 = vpop.eup %1614 }
 0x454   :  { %v1617_v49 = vpop.eup %1616  ;;  %1186 = vst [vmem:[#allocation2 + $0x50] sm:$0xff] %v1170_v23  ;;  %v1145_v50 = vmul.f32 0.6931472, %v1615_v0 }
 0x455   :  { %v1151_v51 = vmul.f32 0.6931472, %v1617_v49 }
 0x456   :  { %v1168_v52 = vsub.f32 %v2003_v41, %v1145_v50 }
 0x457   :  { %v1171_v28 = vsub.f32 %v2006_v42, %v1151_v51 }
 0x458   :  { %v1619_v54 = vpop.eup %1618  ;;  %1184 = vst [vmem:[#allocation2 + $0x40] sm:$0xff] %v1168_v52 }
 0x459   :  { %1187 = vst [vmem:[#allocation2 + $0x58] sm:$0xff] %v1171_v28  ;;  %v1147_v55 = vmul.f32 0.6931472, %v1619_v54 }
 0x45b   :  { %v1169_v56 = vsub.f32 %v2011_v46, %v1147_v55  ;;  %v1121_v59 = vpop.xlane.xlu0 %1120 }
 0x45c   :  { %1620 = vlog2.f32 %v1121_v59 }
 0x45d   :  { %1185 = vst [vmem:[#allocation2 + $0x48] sm:$0xff] %v1169_v56 }
 0x45f   :  { %v1123_v60 = vpop.xlane.xlu1 %1122 }
 0x460   :  { %1622 = vlog2.f32 %v1123_v60  ;;  %v1125_v36 = vpop.xlane.xlu0 %1124 }
 0x461   :  { %1624 = vlog2.f32 %v1125_v36 }
 0x463   :  { %v1127_v62 = vpop.xlane.xlu1 %1126 }
 0x464   :  { %1626 = vlog2.f32 %v1127_v62 }
 0x469   :  { %v1621_v63 = vpop.eup %1620 }
 0x46a   :  { %v1153_v1 = vmul.f32 0.6931472, %v1621_v63 }
 0x46c   :  { %v1172_v41 = vsub.f32 %v2015_v53, %v1153_v1 }
 0x46d   :  { %v1623_v42 = vpop.eup %1622 }
 0x46e   :  { %v1625_v2 = vpop.eup %1624  ;;  %1188 = vst [vmem:[#allocation2 + $0x60] sm:$0xff] %v1172_v41  ;;  %v1155_v5 = vmul.f32 0.6931472, %v1623_v42 }
 0x46f   :  { %v1157_v3 = vmul.f32 0.6931472, %v1625_v2 }
 0x470   :  { %v1173_v46 = vsub.f32 %v2019_v57, %v1155_v5 }
 0x471   :  { %v1627_v7 = vpop.eup %1626  ;;  %v1174_v8 = vsub.f32 %v2022_v58, %v1157_v3 }
 0x472   :  { %1189 = vst [vmem:[#allocation2 + $0x68] sm:$0xff] %v1173_v46  ;;  %v1159_v10 = vmul.f32 0.6931472, %v1627_v7 }
 0x473   :  { %1190 = vst [vmem:[#allocation2 + $0x70] sm:$0xff] %v1174_v8 }
 0x474   :  { %v1175_v4 = vsub.f32 %v2027_v61, %v1159_v10 }
 0x476   :  { %1191 = vst [vmem:[#allocation2 + $0x78] sm:$0xff] %v1175_v4 }
 0x477   :  { %1639 = shalt.err (!%p1636_p4)
}
 0x478   :  { %s1654_s17 = smov 128   ;;  %s1655_s18 = smov 8  }
 0x479   :  { %1203 = dma.vmem_to_hbm [thread:$0]  %s1198_s15, 2048, %s2055_s6, [#allocation3], %s1654_s17, %s1654_s17, %s1655_s18  }
 0x47a   :  { %1648 = dma.done.wait [#allocation3], 2048  }
 0x47b   :  { %1649 = vsyncadd [#allocation3], 4294965248 }
 0x47c   :  { %1207 = vsyncpa [#allocation3], 1 }

</bundles_post_ra>
